<compile_context>
chip_gen: v5e
topology: v5e:2x2
jax: 0.10.0
libtpu: 0.0.40
codegen_flags: <defaults>
</compile_context>

<pallas_src>
import jax
import jax.numpy as jnp
from jax import lax
from jax.experimental import pallas as pl
from jax.experimental.pallas import tpu as pltpu


# ---------------------------------------------------------------------------
# Kernel: five per-row partial sums of pivot-shifted data, accumulated into
# resident VMEM output blocks (one block per N-split).
# ---------------------------------------------------------------------------
def _partial_sums_kernel(pivot_ref, pred_ref, targ_ref,
                         sp_ref, st_ref, spt_ref, sp2_ref, st2_ref):
    k = pl.program_id(1)                   # reduction step within this split

    @pl.when(k == 0)
    def _init():
        sp_ref[...] = jnp.zeros_like(sp_ref)
        st_ref[...] = jnp.zeros_like(st_ref)
        spt_ref[...] = jnp.zeros_like(spt_ref)
        sp2_ref[...] = jnp.zeros_like(sp2_ref)
        st2_ref[...] = jnp.zeros_like(st2_ref)

    piv_p = pivot_ref[0]
    piv_t = pivot_ref[1]
    p = pred_ref[...].astype(jnp.float32) - piv_p      # (rows, tile_n)
    t = targ_ref[...].astype(jnp.float32) - piv_t

    sp_ref[...] += jnp.sum(p, axis=1, keepdims=True)
    st_ref[...] += jnp.sum(t, axis=1, keepdims=True)
    spt_ref[...] += jnp.sum(p * t, axis=1, keepdims=True)
    sp2_ref[...] += jnp.sum(p * p, axis=1, keepdims=True)
    st2_ref[...] += jnp.sum(t * t, axis=1, keepdims=True)


# ---------------------------------------------------------------------------
# Tiling / budget helpers
# ---------------------------------------------------------------------------
def _vmem_budget():
    """Generation-aware budgets: (stream_budget, scoped_limit, physical_cap)."""
    try:
        cap = int(pltpu.get_tpu_info().vmem_capacity_bytes)
    except Exception:
        cap = 64 * 1024 * 1024            # conservative (v7x-sized) fallback
    # 2 inputs x 2 pipeline buffers: ~48 MiB on 128 MiB parts (v5e/v6e),
    # ~24 MiB on v7x (64 MiB physical; leave compiler headroom).
    budget = min(48 << 20, max(8 << 20, cap // 2 - (8 << 20)))
    limit = min(cap - (8 << 20), budget + (16 << 20))
    return budget, limit, cap


def _choose_pack(n_rows, n_cols):
    """Sublane packing factor S: (B, N) -> (B*S, N/S) to fill 8 f32 sublanes."""
    if n_rows >= 8:
        return 1
    best = 1
    for s in range(2, 8 // n_rows + 1):
        if n_cols % s == 0 and (n_cols // s) >= 128:
            best = s
    return best


def _plan_tiles(rows_packed, n_packed, itemsize, budget, max_lanes=None):
    """Returns (tile_n, n_splits, tiles_per_split, n_pad)."""
    lane_blocks = pl.cdiv(n_packed, 128)
    if lane_blocks < 2:
        # Tiny lane extent: one unsplit, unpadded block (block == full dims).
        return n_packed, 1, 1, n_packed
    max_t = budget // (4 * rows_packed * itemsize)      # 2 inputs x 2 buffers
    if max_lanes is not None:
        max_t = min(max_t, max_lanes)
    max_blocks = max(1, max_t // 128)
    n_splits = 2                                        # 2 TCs on v7x; cheap elsewhere
    blocks_per_split = pl.cdiv(lane_blocks, n_splits)
    # Never pick a tile larger than the budget allows; floor at 128 lanes.
    # TODO(synk): add a row-tiled grid axis for pathological row counts where
    #             even a 128-lane tile exceeds the scoped-VMEM budget.
    tile_blocks = max(1, min(max_blocks, blocks_per_split))
    tiles_per_split = pl.cdiv(blocks_per_split, tile_blocks)
    tile_n = tile_blocks * 128
    n_pad = n_splits * tiles_per_split * tile_n
    return tile_n, n_splits, tiles_per_split, n_pad


# ---------------------------------------------------------------------------
# Public entry point
# ---------------------------------------------------------------------------
def neg_pearson_loss(predictions, targets, max_lanes=None):
    # --- PyTorch-forward glue -------------------------------------------------
    targets = targets[:, :]
    # torch.squeeze drops ALL size-1 dims; keep the batch dim so B == 1 still
    # yields the intended (batch, length) layout.
    squeeze_axes = tuple(i for i, d in enumerate(predictions.shape)
                         if d == 1 and i != 0)
    if squeeze_axes:
        predictions = jnp.squeeze(predictions, axis=squeeze_axes)
    assert predictions.shape == targets.shape and predictions.ndim == 2, (
        predictions.shape, targets.shape)
    n_rows, n_cols = predictions.shape

    # Pivot shift (exact: Pearson and global standardization are shift-invariant)
    piv_p = predictions[0, 0].astype(jnp.float32)
    piv_t = targets[0, 0].astype(jnp.float32)
    pivots = jnp.stack([piv_p, piv_t])

    # --- sublane packing for small batch (free row-major reshape) -------------
    s_pack = _choose_pack(n_rows, n_cols)
    rows_packed = n_rows * s_pack
    n_packed = n_cols // s_pack
    pred_p = predictions.reshape(rows_packed, n_packed)
    targ_p = targets.reshape(rows_packed, n_packed)

    # --- generation-aware tiling ----------------------------------------------
    itemsize = max(jnp.dtype(predictions.dtype).itemsize,
                   jnp.dtype(targets.dtype).itemsize)
    budget, limit, cap = _vmem_budget()
    tile_n, n_splits, tiles_per_split, n_pad = _plan_tiles(
        rows_packed, n_packed, itemsize, budget, max_lanes)
    need = 4 * rows_packed * tile_n * itemsize + 10 * rows_packed * 4 + (2 << 20)
    vmem_limit = int(min(cap - (4 << 20), max(limit, need)))

    pad_cols = n_pad - n_packed
    if pad_cols:
        # Zero padding: padded entries are removed exactly in the finalize.
        pred_p = jnp.pad(pred_p, ((0, 0), (0, pad_cols)))
        targ_p = jnp.pad(targ_p, ((0, 0), (0, pad_cols)))

    tps = tiles_per_split
    in_tile_spec = pl.BlockSpec((rows_packed, tile_n),
                                lambda c, k: (0, c * tps + k))
    stat_shape = jax.ShapeDtypeStruct((n_splits, rows_packed, 1), jnp.float32)
    stat_spec = pl.BlockSpec((None, rows_packed, 1), lambda c, k: (c, 0, 0))

    cost = pl.CostEstimate(
        flops=8 * rows_packed * n_pad,
        transcendentals=0,
        bytes_accessed=2 * rows_packed * n_pad * itemsize
                       + 5 * n_splits * rows_packed * 4 + 8)

    sp, st, spt, sp2, st2 = pl.pallas_call(
        _partial_sums_kernel,
        out_shape=(stat_shape,) * 5,
        grid=(n_splits, tiles_per_split),
        in_specs=[
            pl.BlockSpec(memory_space=pltpu.MemorySpace.SMEM),   # pivots
            in_tile_spec,                                        # predictions
            in_tile_spec,                                        # targets
        ],
        out_specs=(stat_spec,) * 5,
        compiler_params=pltpu.CompilerParams(
            # N-split axis is parallel (v7x megacore), per-split tiles are the
            # reduction (resident accumulator output blocks).
            dimension_semantics=("parallel", "arbitrary"),
            vmem_limit_bytes=vmem_limit,
        ),
        cost_estimate=cost,
    )(pivots, pred_p, targ_p)

    # --- tiny wrapper-side finalize (a few flops per row) ----------------------
    sp = jnp.sum(sp, axis=0)[:, 0]
    st = jnp.sum(st, axis=0)[:, 0]
    spt = jnp.sum(spt, axis=0)[:, 0]
    sp2 = jnp.sum(sp2, axis=0)[:, 0]
    st2 = jnp.sum(st2, axis=0)[:, 0]

    if pad_cols:
        # Each padded column contributed (0 - pivot) after the in-kernel shift.
        sp = sp + pad_cols * piv_p
        st = st + pad_cols * piv_t
        spt = spt - pad_cols * piv_p * piv_t
        sp2 = sp2 - pad_cols * piv_p * piv_p
        st2 = st2 - pad_cols * piv_t * piv_t

    if s_pack > 1:
        sp = sp.reshape(n_rows, s_pack).sum(axis=1)
        st = st.reshape(n_rows, s_pack).sum(axis=1)
        spt = spt.reshape(n_rows, s_pack).sum(axis=1)
        sp2 = sp2.reshape(n_rows, s_pack).sum(axis=1)
        st2 = st2.reshape(n_rows, s_pack).sum(axis=1)

    # Global mean / UNBIASED std (torch defaults) of the (shifted) data, then
    # standardization applied algebraically to the per-row scalar sums.
    Nf = jnp.float32(n_cols)
    total = jnp.float32(n_rows * n_cols)
    m_p = jnp.sum(sp) / total
    m_t = jnp.sum(st) / total
    var_p = (jnp.sum(sp2) - total * m_p * m_p) / (total - 1.0)
    var_t = (jnp.sum(st2) - total * m_t * m_t) / (total - 1.0)
    inv_sp = lax.rsqrt(var_p)
    inv_st = lax.rsqrt(var_t)

    sum_x = (sp - Nf * m_p) * inv_sp
    sum_y = (st - Nf * m_t) * inv_st
    sum_xy = (spt - m_t * sp - m_p * st + Nf * m_p * m_t) * (inv_sp * inv_st)
    sum_x2 = (sp2 - 2.0 * m_p * sp + Nf * m_p * m_p) * (inv_sp * inv_sp)
    sum_y2 = (st2 - 2.0 * m_t * st + Nf * m_t * m_t) * (inv_st * inv_st)

    num = Nf * sum_xy - sum_x * sum_y
    den_sq = (Nf * sum_x2 - sum_x * sum_x) * (Nf * sum_y2 - sum_y * sum_y)
    pearson = num * lax.rsqrt(den_sq)
    return jnp.mean(1.0 - pearson)


# ---------------------------------------------------------------------------
# Pure-JAX reference (two-pass), mirroring the PyTorch code.
# ---------------------------------------------------------------------------
def _neg_pearson_ref(predictions, targets):
    t = targets[:, :].astype(jnp.float32)
    squeeze_axes = tuple(i for i, d in enumerate(predictions.shape)
                         if d == 1 and i != 0)
    p = predictions
    if squeeze_axes:
        p = jnp.squeeze(p, axis=squeeze_axes)
    p = p.astype(jnp.float32)
    p = (p - jnp.mean(p)) / jnp.std(p, ddof=1)
    t = (t - jnp.mean(t)) / jnp.std(t, ddof=1)
    N = p.shape[1]
    sum_x = jnp.sum(p, axis=1)
    sum_y = jnp.sum(t, axis=1)
    sum_xy = jnp.sum(p * t, axis=1)
    sum_x2 = jnp.sum(p * p, axis=1)
    sum_y2 = jnp.sum(t * t, axis=1)
    pearson = (N * sum_xy - sum_x * sum_y) / jnp.sqrt(
        (N * sum_x2 - sum_x ** 2) * (N * sum_y2 - sum_y ** 2))
    return jnp.mean(1.0 - pearson)


if __name__ == "__main__":
    key = jax.random.PRNGKey(0)

    def check(bsz, n, seed, max_lanes=None, offset=0.0):
        kp, kt = jax.random.split(jax.random.fold_in(key, seed))
        preds = jax.random.normal(kp, (bsz, n, 1), dtype=jnp.float32) + offset
        targs = jax.random.normal(kt, (bsz, n), dtype=jnp.float32) + offset
        out = neg_pearson_loss(preds, targs, max_lanes=max_lanes)
        jax.block_until_ready(out)
        ref = _neg_pearson_ref(preds, targs)
        assert jnp.allclose(out, ref, atol=2e-4, rtol=2e-4), (bsz, n, out, ref)
        return out

    # Primary small shape (batch=2, seq=128), plus paths exercising lane
    # padding (unaligned N), sublane packing (small B, larger N), and
    # multi-tile accumulation + pivot shift on offset data.
    check(2, 128, 0)
    check(2, 200, 1)                                # pads 200 -> 2 x 128
    check(2, 512, 2)                                # packs (2,512) -> (8,128)
    check(2, 2048, 3, max_lanes=128, offset=5.0)    # grid (2,2) accumulation
    print("KERNEL_OK")
</pallas_src>

<mosaic_0001>
module attributes {stable_mosaic.version = 11 : i64} {
  func.func @_partial_sums_kernel(%arg0: i32, %arg1: i32, %arg2: memref<2xf32, #tpu.memory_space<smem>>, %arg3: memref<2x128xf32, #tpu.memory_space<vmem>>, %arg4: memref<2x128xf32, #tpu.memory_space<vmem>>, %arg5: memref<1x2x1xf32, #tpu.memory_space<vmem>>, %arg6: memref<1x2x1xf32, #tpu.memory_space<vmem>>, %arg7: memref<1x2x1xf32, #tpu.memory_space<vmem>>, %arg8: memref<1x2x1xf32, #tpu.memory_space<vmem>>, %arg9: memref<1x2x1xf32, #tpu.memory_space<vmem>>) attributes {dimension_semantics = [#tpu.dimension_semantics<parallel>, #tpu.dimension_semantics<arbitrary>], iteration_bounds = array<i64: 1, 1>, scalar_prefetch = 0 : i64, scratch_operands = 0 : i64, tpu.core_type = #tpu.core_type<tc>, window_params = [{transform_indices = @transform_0, window_bounds = array<i64: 2>}, {transform_indices = @transform_1, window_bounds = array<i64: 2, 128>}, {transform_indices = @transform_2, window_bounds = array<i64: 2, 128>}, {transform_indices = @transform_3, window_bounds = array<i64: 1, 2, 1>}, {transform_indices = @transform_4, window_bounds = array<i64: 1, 2, 1>}, {transform_indices = @transform_5, window_bounds = array<i64: 1, 2, 1>}, {transform_indices = @transform_6, window_bounds = array<i64: 1, 2, 1>}, {transform_indices = @transform_7, window_bounds = array<i64: 1, 2, 1>}]} {
    %c0_i32 = arith.constant 0 : i32
    %0 = arith.cmpi eq, %arg1, %c0_i32 : i32
    %1 = arith.extui %0 : i1 to i32
    %c0_i32_0 = arith.constant 0 : i32
    %2 = arith.cmpi ne, %1, %c0_i32_0 : i32
    scf.if %2 {
      %cst_39 = arith.constant 0.000000e+00 : f32
      %54 = vector.broadcast %cst_39 : f32 to vector<2x1xf32>
      %c0_40 = arith.constant 0 : index
      %c0_41 = arith.constant 0 : index
      %c0_42 = arith.constant 0 : index
      %55 = vector.load %arg5[%c0_40, %c0_41, %c0_42] : memref<1x2x1xf32, #tpu.memory_space<vmem>>, vector<1x2x1xf32>
      %56 = vector.shape_cast %55 : vector<1x2x1xf32> to vector<2x1xf32>
      %57 = vector.shape_cast %54 : vector<2x1xf32> to vector<1x2x1xf32>
      tpu.vector_store %arg5[%c0_40, %c0_41, %c0_42], %57 {strides = array<i32>} : memref<1x2x1xf32, #tpu.memory_space<vmem>>, vector<1x2x1xf32>,
      %cst_43 = arith.constant 0.000000e+00 : f32
      %58 = vector.broadcast %cst_43 : f32 to vector<2x1xf32>
      %c0_44 = arith.constant 0 : index
      %c0_45 = arith.constant 0 : index
      %c0_46 = arith.constant 0 : index
      %59 = vector.load %arg6[%c0_44, %c0_45, %c0_46] : memref<1x2x1xf32, #tpu.memory_space<vmem>>, vector<1x2x1xf32>
      %60 = vector.shape_cast %59 : vector<1x2x1xf32> to vector<2x1xf32>
      %61 = vector.shape_cast %58 : vector<2x1xf32> to vector<1x2x1xf32>
      tpu.vector_store %arg6[%c0_44, %c0_45, %c0_46], %61 {strides = array<i32>} : memref<1x2x1xf32, #tpu.memory_space<vmem>>, vector<1x2x1xf32>,
      %cst_47 = arith.constant 0.000000e+00 : f32
      %62 = vector.broadcast %cst_47 : f32 to vector<2x1xf32>
      %c0_48 = arith.constant 0 : index
      %c0_49 = arith.constant 0 : index
      %c0_50 = arith.constant 0 : index
      %63 = vector.load %arg7[%c0_48, %c0_49, %c0_50] : memref<1x2x1xf32, #tpu.memory_space<vmem>>, vector<1x2x1xf32>
      %64 = vector.shape_cast %63 : vector<1x2x1xf32> to vector<2x1xf32>
      %65 = vector.shape_cast %62 : vector<2x1xf32> to vector<1x2x1xf32>
      tpu.vector_store %arg7[%c0_48, %c0_49, %c0_50], %65 {strides = array<i32>} : memref<1x2x1xf32, #tpu.memory_space<vmem>>, vector<1x2x1xf32>,
      %cst_51 = arith.constant 0.000000e+00 : f32
      %66 = vector.broadcast %cst_51 : f32 to vector<2x1xf32>
      %c0_52 = arith.constant 0 : index
      %c0_53 = arith.constant 0 : index
      %c0_54 = arith.constant 0 : index
      %67 = vector.load %arg8[%c0_52, %c0_53, %c0_54] : memref<1x2x1xf32, #tpu.memory_space<vmem>>, vector<1x2x1xf32>
      %68 = vector.shape_cast %67 : vector<1x2x1xf32> to vector<2x1xf32>
      %69 = vector.shape_cast %66 : vector<2x1xf32> to vector<1x2x1xf32>
      tpu.vector_store %arg8[%c0_52, %c0_53, %c0_54], %69 {strides = array<i32>} : memref<1x2x1xf32, #tpu.memory_space<vmem>>, vector<1x2x1xf32>,
      %cst_55 = arith.constant 0.000000e+00 : f32
      %70 = vector.broadcast %cst_55 : f32 to vector<2x1xf32>
      %c0_56 = arith.constant 0 : index
      %c0_57 = arith.constant 0 : index
      %c0_58 = arith.constant 0 : index
      %71 = vector.load %arg9[%c0_56, %c0_57, %c0_58] : memref<1x2x1xf32, #tpu.memory_space<vmem>>, vector<1x2x1xf32>
      %72 = vector.shape_cast %71 : vector<1x2x1xf32> to vector<2x1xf32>
      %73 = vector.shape_cast %70 : vector<2x1xf32> to vector<1x2x1xf32>
      tpu.vector_store %arg9[%c0_56, %c0_57, %c0_58], %73 {strides = array<i32>} : memref<1x2x1xf32, #tpu.memory_space<vmem>>, vector<1x2x1xf32>,
    } else {
    }
    %c0 = arith.constant 0 : index
    %3 = memref.load %arg2[%c0] : memref<2xf32, #tpu.memory_space<smem>>
    %c1 = arith.constant 1 : index
    %4 = memref.load %arg2[%c1] : memref<2xf32, #tpu.memory_space<smem>>
    %c0_1 = arith.constant 0 : index
    %c0_2 = arith.constant 0 : index
    %5 = vector.load %arg3[%c0_1, %c0_2] : memref<2x128xf32, #tpu.memory_space<vmem>>, vector<2x128xf32>
    %6 = vector.broadcast %3 : f32 to vector<2x128xf32>
    %7 = arith.subf %5, %6 : vector<2x128xf32>
    %c0_3 = arith.constant 0 : index
    %c0_4 = arith.constant 0 : index
    %8 = vector.load %arg4[%c0_3, %c0_4] : memref<2x128xf32, #tpu.memory_space<vmem>>, vector<2x128xf32>
    %9 = vector.broadcast %4 : f32 to vector<2x128xf32>
    %10 = arith.subf %8, %9 : vector<2x128xf32>
    %c0_5 = arith.constant 0 : index
    %c0_6 = arith.constant 0 : index
    %c0_7 = arith.constant 0 : index
    %11 = vector.load %arg5[%c0_5, %c0_6, %c0_7] : memref<1x2x1xf32, #tpu.memory_space<vmem>>, vector<1x2x1xf32>
    %12 = vector.shape_cast %11 : vector<1x2x1xf32> to vector<2x1xf32>
    %cst = arith.constant dense<0.000000e+00> : vector<2xf32>
    %13 = vector.multi_reduction <add>, %7, %cst [1] : vector<2x128xf32> to vector<2xf32>
    %14 = vector.shape_cast %13 : vector<2xf32> to vector<2x1xf32>
    %15 = arith.addf %12, %14 : vector<2x1xf32>
    %c0_8 = arith.constant 0 : index
    %c0_9 = arith.constant 0 : index
    %c0_10 = arith.constant 0 : index
    %16 = vector.load %arg5[%c0_8, %c0_9, %c0_10] : memref<1x2x1xf32, #tpu.memory_space<vmem>>, vector<1x2x1xf32>
    %17 = vector.shape_cast %16 : vector<1x2x1xf32> to vector<2x1xf32>
    %18 = vector.shape_cast %15 : vector<2x1xf32> to vector<1x2x1xf32>
    tpu.vector_store %arg5[%c0_8, %c0_9, %c0_10], %18 {strides = array<i32>} : memref<1x2x1xf32, #tpu.memory_space<vmem>>, vector<1x2x1xf32>,
    %c0_11 = arith.constant 0 : index
    %c0_12 = arith.constant 0 : index
    %c0_13 = arith.constant 0 : index
    %19 = vector.load %arg6[%c0_11, %c0_12, %c0_13] : memref<1x2x1xf32, #tpu.memory_space<vmem>>, vector<1x2x1xf32>
    %20 = vector.shape_cast %19 : vector<1x2x1xf32> to vector<2x1xf32>
    %cst_14 = arith.constant dense<0.000000e+00> : vector<2xf32>
    %21 = vector.multi_reduction <add>, %10, %cst_14 [1] : vector<2x128xf32> to vector<2xf32>
    %22 = vector.shape_cast %21 : vector<2xf32> to vector<2x1xf32>
    %23 = arith.addf %20, %22 : vector<2x1xf32>
    %c0_15 = arith.constant 0 : index
    %c0_16 = arith.constant 0 : index
    %c0_17 = arith.constant 0 : index
    %24 = vector.load %arg6[%c0_15, %c0_16, %c0_17] : memref<1x2x1xf32, #tpu.memory_space<vmem>>, vector<1x2x1xf32>
    %25 = vector.shape_cast %24 : vector<1x2x1xf32> to vector<2x1xf32>
    %26 = vector.shape_cast %23 : vector<2x1xf32> to vector<1x2x1xf32>
    tpu.vector_store %arg6[%c0_15, %c0_16, %c0_17], %26 {strides = array<i32>} : memref<1x2x1xf32, #tpu.memory_space<vmem>>, vector<1x2x1xf32>,
    %c0_18 = arith.constant 0 : index
    %c0_19 = arith.constant 0 : index
    %c0_20 = arith.constant 0 : index
    %27 = vector.load %arg7[%c0_18, %c0_19, %c0_20] : memref<1x2x1xf32, #tpu.memory_space<vmem>>, vector<1x2x1xf32>
    %28 = vector.shape_cast %27 : vector<1x2x1xf32> to vector<2x1xf32>
    %29 = arith.mulf %7, %10 : vector<2x128xf32>
    %cst_21 = arith.constant dense<0.000000e+00> : vector<2xf32>
    %30 = vector.multi_reduction <add>, %29, %cst_21 [1] : vector<2x128xf32> to vector<2xf32>
    %31 = vector.shape_cast %30 : vector<2xf32> to vector<2x1xf32>
    %32 = arith.addf %28, %31 : vector<2x1xf32>
    %c0_22 = arith.constant 0 : index
    %c0_23 = arith.constant 0 : index
    %c0_24 = arith.constant 0 : index
    %33 = vector.load %arg7[%c0_22, %c0_23, %c0_24] : memref<1x2x1xf32, #tpu.memory_space<vmem>>, vector<1x2x1xf32>
    %34 = vector.shape_cast %33 : vector<1x2x1xf32> to vector<2x1xf32>
    %35 = vector.shape_cast %32 : vector<2x1xf32> to vector<1x2x1xf32>
    tpu.vector_store %arg7[%c0_22, %c0_23, %c0_24], %35 {strides = array<i32>} : memref<1x2x1xf32, #tpu.memory_space<vmem>>, vector<1x2x1xf32>,
    %c0_25 = arith.constant 0 : index
    %c0_26 = arith.constant 0 : index
    %c0_27 = arith.constant 0 : index
    %36 = vector.load %arg8[%c0_25, %c0_26, %c0_27] : memref<1x2x1xf32, #tpu.memory_space<vmem>>, vector<1x2x1xf32>
    %37 = vector.shape_cast %36 : vector<1x2x1xf32> to vector<2x1xf32>
    %38 = arith.mulf %7, %7 : vector<2x128xf32>
    %cst_28 = arith.constant dense<0.000000e+00> : vector<2xf32>
    %39 = vector.multi_reduction <add>, %38, %cst_28 [1] : vector<2x128xf32> to vector<2xf32>
    %40 = vector.shape_cast %39 : vector<2xf32> to vector<2x1xf32>
    %41 = arith.addf %37, %40 : vector<2x1xf32>
    %c0_29 = arith.constant 0 : index
    %c0_30 = arith.constant 0 : index
    %c0_31 = arith.constant 0 : index
    %42 = vector.load %arg8[%c0_29, %c0_30, %c0_31] : memref<1x2x1xf32, #tpu.memory_space<vmem>>, vector<1x2x1xf32>
    %43 = vector.shape_cast %42 : vector<1x2x1xf32> to vector<2x1xf32>
    %44 = vector.shape_cast %41 : vector<2x1xf32> to vector<1x2x1xf32>
    tpu.vector_store %arg8[%c0_29, %c0_30, %c0_31], %44 {strides = array<i32>} : memref<1x2x1xf32, #tpu.memory_space<vmem>>, vector<1x2x1xf32>,
    %c0_32 = arith.constant 0 : index
    %c0_33 = arith.constant 0 : index
    %c0_34 = arith.constant 0 : index
    %45 = vector.load %arg9[%c0_32, %c0_33, %c0_34] : memref<1x2x1xf32, #tpu.memory_space<vmem>>, vector<1x2x1xf32>
    %46 = vector.shape_cast %45 : vector<1x2x1xf32> to vector<2x1xf32>
    %47 = arith.mulf %10, %10 : vector<2x128xf32>
    %cst_35 = arith.constant dense<0.000000e+00> : vector<2xf32>
    %48 = vector.multi_reduction <add>, %47, %cst_35 [1] : vector<2x128xf32> to vector<2xf32>
    %49 = vector.shape_cast %48 : vector<2xf32> to vector<2x1xf32>
    %50 = arith.addf %46, %49 : vector<2x1xf32>
    %c0_36 = arith.constant 0 : index
    %c0_37 = arith.constant 0 : index
    %c0_38 = arith.constant 0 : index
    %51 = vector.load %arg9[%c0_36, %c0_37, %c0_38] : memref<1x2x1xf32, #tpu.memory_space<vmem>>, vector<1x2x1xf32>
    %52 = vector.shape_cast %51 : vector<1x2x1xf32> to vector<2x1xf32>
    %53 = vector.shape_cast %50 : vector<2x1xf32> to vector<1x2x1xf32>
    tpu.vector_store %arg9[%c0_36, %c0_37, %c0_38], %53 {strides = array<i32>} : memref<1x2x1xf32, #tpu.memory_space<vmem>>, vector<1x2x1xf32>,
    return
  }
  func.func @transform_0(%arg0: i32, %arg1: i32) -> i32 {
    %c0_i32 = arith.constant 0 : i32
    %c0_i32_0 = arith.constant 0 : i32
    return %c0_i32 : i32
  }
  func.func @transform_1(%arg0: i32, %arg1: i32) -> (i32, i32) {
    %c1_i32 = arith.constant 1 : i32
    %0 = arith.muli %arg0, %c1_i32 : i32
    %1 = arith.addi %0, %arg1 : i32
    %c0_i32 = arith.constant 0 : i32
    %c0_i32_0 = arith.constant 0 : i32
    return %c0_i32, %1 : i32, i32
  }
  func.func @transform_2(%arg0: i32, %arg1: i32) -> (i32, i32) {
    %c1_i32 = arith.constant 1 : i32
    %0 = arith.muli %arg0, %c1_i32 : i32
    %1 = arith.addi %0, %arg1 : i32
    %c0_i32 = arith.constant 0 : i32
    %c0_i32_0 = arith.constant 0 : i32
    return %c0_i32, %1 : i32, i32
  }
  func.func @transform_3(%arg0: i32, %arg1: i32) -> (i32, i32, i32) {
    %c0_i32 = arith.constant 0 : i32
    %c0_i32_0 = arith.constant 0 : i32
    %c0_i32_1 = arith.constant 0 : i32
    return %arg0, %c0_i32, %c0_i32_0 : i32, i32, i32
  }
  func.func @transform_4(%arg0: i32, %arg1: i32) -> (i32, i32, i32) {
    %c0_i32 = arith.constant 0 : i32
    %c0_i32_0 = arith.constant 0 : i32
    %c0_i32_1 = arith.constant 0 : i32
    return %arg0, %c0_i32, %c0_i32_0 : i32, i32, i32
  }
  func.func @transform_5(%arg0: i32, %arg1: i32) -> (i32, i32, i32) {
    %c0_i32 = arith.constant 0 : i32
    %c0_i32_0 = arith.constant 0 : i32
    %c0_i32_1 = arith.constant 0 : i32
    return %arg0, %c0_i32, %c0_i32_0 : i32, i32, i32
  }
  func.func @transform_6(%arg0: i32, %arg1: i32) -> (i32, i32, i32) {
    %c0_i32 = arith.constant 0 : i32
    %c0_i32_0 = arith.constant 0 : i32
    %c0_i32_1 = arith.constant 0 : i32
    return %arg0, %c0_i32, %c0_i32_0 : i32, i32, i32
  }
  func.func @transform_7(%arg0: i32, %arg1: i32) -> (i32, i32, i32) {
    %c0_i32 = arith.constant 0 : i32
    %c0_i32_0 = arith.constant 0 : i32
    %c0_i32_1 = arith.constant 0 : i32
    return %arg0, %c0_i32, %c0_i32_0 : i32, i32, i32
  }
}

</mosaic_0001>

<bundles_post_ra>
// kernel: tpu_custom_call.1
= control target key start
LH: loop header
LB: loop body
LE: loop exit
PB: predicated region body
PF: predicated region fallthrough
CT: control target
= control target key end

     0   :  { %13 = vsyncpa [#allocation4], 0  ;;  %s323_s0 = inlined_call_operand.hbm [shape: f32[2], index: 0, kind: input, shape index: {}]   ;;  %s324_s1 = inlined_call_operand.hbm [shape: f32[2,128], index: 1, kind: input, shape index: {}]   ;;  %s325_s2 = inlined_call_operand.hbm [shape: f32[2,128], index: 2, kind: input, shape index: {}]   ;;  %s326_s3 = inlined_call_operand.vmem [shape: f32[1,2,1], index: 3, kind: output, shape index: {0}]   ;;  %s327_s4 = inlined_call_operand.vmem [shape: f32[1,2,1], index: 4, kind: output, shape index: {1}]   ;;  %s328_s5 = inlined_call_operand.vmem [shape: f32[1,2,1], index: 5, kind: output, shape index: {2}]   ;;  %s329_s6 = inlined_call_operand.vmem [shape: f32[1,2,1], index: 6, kind: output, shape index: {3}]   ;;  %s330_s7 = inlined_call_operand.vmem [shape: f32[1,2,1], index: 7, kind: output, shape index: {4}]  }
   0x1   :  { %14 = vsyncpa [#allocation3], 0  ;;  %s21_s26 = sshll.u32 %s323_s0, 4  ;;  %s22_s26 = int_to_ptr.hbm [resolvable:$true] %s21_s26 }
   0x2   :  { %15 = vsyncpa [#allocation7], 0  ;;  %s33_s29 = sshll.u32 %s324_s1, 4  ;;  %s215_s30 = smov [#allocation2]   ;;  %s34_s29 = int_to_ptr.hbm [resolvable:$true] %s33_s29 }
   0x3   :  { %24 = dma.hbm_to_smem %s22_s26, 16, %s215_s30, [#allocation4]  }
   0x4   :  { %s216_s8 = smov [#allocation5]   ;;  %s47_s12 = sshll.u32 %s325_s2, 4  ;;  %s48_s12 = int_to_ptr.hbm [resolvable:$true] %s47_s12 }
   0x5   :  { %s35_s9 = sshll.u32 %s216_s8, 4  ;;  %s217_s13 = smov [#allocation6]   ;;  %s36_s9 = int_to_ptr.vmem [resolvable:$true] %s35_s9 }
   0x6   :  { %38 = dma.hbm_to_vmem [thread:$0]  %s34_s29, 32, %s36_s9, [#allocation3]  }
   0x7   :  { %s49_s0 = sshll.u32 %s217_s13, 4  ;;  %s50_s0 = int_to_ptr.vmem [resolvable:$true] %s49_s0 }
   0x8   :  { %52 = dma.hbm_to_vmem [thread:$0]  %s48_s12, 32, %s50_s0, [#allocation7]  }
   0x9   :  { %209 = dma.done.wait [#allocation4], 16  }
   0xa   :  { %210 = vsyncadd [#allocation4], 4294967280 }
   0xb   :  { %211 = dma.done.wait [#allocation3], 32  }
   0xc   :  { %212 = vsyncadd [#allocation3], 4294967264 }
   0xd   :  { %213 = dma.done.wait [#allocation7], 32  }
   0xe   :  { %214 = vsyncadd [#allocation7], 4294967264 }
   0xf   :  { %65 = sfence }
  0x10   :  { %s78_s1 = sld [smem:[#allocation2]]  ;;  %v80_v0 = vld [vmem:[#allocation5] sm:$0x3]  ;;  %v83_v1 = vld [vmem:[#allocation6] sm:$0x3]  ;;  %vm87_vm0 = vcmask 1041408  }
  0x11   :  { %s144_s14 = sld [smem:[#allocation2 + $0x1]]  ;;  %vm72_vm1 = vcmask 1024   ;;  %v218_v14 = vmov 0.0  }
  0x12   :  { %75 = vst.msk [vmem:[%s328_s5] sm:$0x3] %vm72_vm1, %v218_v14 }
  0x13   :  { %73 = vst.msk [vmem:[%s326_s3] sm:$0x3] %vm72_vm1, %v218_v14 }
  0x14   :  { %74 = vst.msk [vmem:[%s327_s4] sm:$0x3] %vm72_vm1, %v218_v14 }
  0x15   :  { %76 = vst.msk [vmem:[%s329_s6] sm:$0x3] %vm72_vm1, %v218_v14 }
  0x16   :  { %v81_v2 = vstv %s78_s1  ;;  %77 = vst.msk [vmem:[%s330_s7] sm:$0x3] %vm72_vm1, %v218_v14 }
  0x17   :  { %v82_v3 = vsub.f32 %v80_v0, %v81_v2  ;;  %v84_v4 = vstv %s144_s14 }
  0x18   :  { %v85_v5 = vsub.f32 %v83_v1, %v84_v4 }
  0x19   :  { %v88_v6 = vsel %vm87_vm0, %v82_v3, 0.0  ;;  %v108_v11 = vmul.f32 %v82_v3, %v82_v3  ;;  %v100_v17 = vld [vmem:[%s328_s5] sm:$0x3] }
  0x1a   :  { %v101_v7 = vmul.f32 %v85_v5, %v82_v3  ;;  %89 = vadd.xlane.f32.xlu0 %v88_v6  ;;  %v115_v8 = vmul.f32 %v85_v5, %v85_v5  ;;  %v95_v12 = vsel %vm87_vm0, %v85_v5, 0.0  ;;  %v86_v15 = vld [vmem:[%s326_s3] sm:$0x3] }
  0x1b   :  { %v109_v13 = vsel %vm87_vm0, %v108_v11, 0.0  ;;  %v94_v24 = vld [vmem:[%s327_s4] sm:$0x3] }
  0x1c   :  { %v102_v9 = vsel %vm87_vm0, %v101_v7, 0.0  ;;  %v116_v10 = vsel %vm87_vm0, %v115_v8, 0.0  ;;  %v107_v26 = vld [vmem:[%s329_s6] sm:$0x3] }
  0x1d   :  { %103 = vadd.xlane.f32.xlu1 %v102_v9  ;;  %117 = vadd.xlane.f32.xlu2 %v116_v10  ;;  %v114_v19 = vld [vmem:[%s330_s7] sm:$0x3] }
  0x22   :  { %96 = vadd.xlane.f32.xlu0 %v95_v12 }
  0x25   :  { %110 = vadd.xlane.f32.xlu1 %v109_v13 }
  0x8d   :  { %v90_v16 = vpop.xlane.xlu0 %89 }
  0x8e   :  { %v91_v18 = vadd.f32 %v90_v16, %v86_v15 }
  0x90   :  { %v104_v20 = vpop.xlane.xlu1 %103  ;;  %93 = vst.msk [vmem:[%s326_s3] sm:$0x3] %vm72_vm1, %v91_v18  ;;  %v118_v21 = vpop.xlane.xlu2 %117 }
  0x91   :  { %v105_v22 = vadd.f32 %v104_v20, %v100_v17  ;;  %v119_v23 = vadd.f32 %v118_v21, %v114_v19 }
  0x93   :  { %106 = vst.msk [vmem:[%s328_s5] sm:$0x3] %vm72_vm1, %v105_v22 }
  0x94   :  { %120 = vst.msk [vmem:[%s330_s7] sm:$0x3] %vm72_vm1, %v119_v23 }
  0x95   :  { %v97_v25 = vpop.xlane.xlu0 %96 }
  0x96   :  { %v98_v27 = vadd.f32 %v97_v25, %v94_v24 }
  0x98   :  { %v111_v28 = vpop.xlane.xlu1 %110  ;;  %99 = vst.msk [vmem:[%s327_s4] sm:$0x3] %vm72_vm1, %v98_v27 }
  0x99   :  { %v112_v29 = vadd.f32 %v111_v28, %v107_v26 }
  0x9b   :  { %113 = vst.msk [vmem:[%s329_s6] sm:$0x3] %vm72_vm1, %v112_v29 }
  0x9c   :  { %141 = vsyncpa [#allocation3], 1 }
  0x9d   :  { %142 = vsyncpa [#allocation7], 1 }
  0x9e   :  { %143 = vsyncpa [#allocation4], 1 }

</bundles_post_ra>
